<compile_context>
chip_gen: v5e
topology: v5e:2x2
jax: 0.10.0
libtpu: 0.0.40
codegen_flags: <defaults>
</compile_context>

<pallas_src>
import functools
import math

import jax
import jax.numpy as jnp
from jax.experimental import pallas as pl
from jax.experimental.pallas import tpu as pltpu


def _mha_root_enhance_kernel(x_ref, xq_ref, m_ref, mq_ref, wq_ref, wkv_ref,
                             o_ref, kv_ref, acc_ref, *, n_head, neg_slope):
    """One grid step = (batch block b, query tile qi).

    x_ref   : (TB, L,  H)   bf16   full-sequence block (K/V + root source)
    xq_ref  : (TB, TQ, H)   bf16   query-tile rows of the same x
    m_ref   : (TB, L,  1)   f32    validity mask (full sequence)
    mq_ref  : (TB, TQ, 1)   f32    validity mask (query tile)
    wq_ref  : (H,  H)       bf16   Wq^T (1/scale already folded in)
    wkv_ref : (2H, 2H)      bf16   Wkv^T
    o_ref   : (TB, TQ, H)   f32    output block
    kv_ref  : (TB, L, 2H)   bf16   scratch; persists across query tiles
    acc_ref : (TB, TQ, H)   f32    scratch output slab
    """
    TB, L, H = x_ref.shape
    d = H // n_head
    qi = pl.program_id(1)

    # ---- K/V projection: computed once per batch block (first query tile) ----
    @pl.when(qi == 0)
    def _compute_kv():
        wkv_x = wkv_ref[:H, :]        # (H, 2H), acts on x
        wkv_r = wkv_ref[H:, :]        # (H, 2H), acts on root
        for b in range(TB):
            xb = x_ref[b]             # (L, H) bf16
            mb = m_ref[b]             # (L, 1) f32
            kv_x = jnp.dot(xb, wkv_x, preferred_element_type=jnp.float32)    # (L, 2H)
            # root is rank-1 per batch: root[t, :] = mb[t] * xb[0, :]
            #   => root @ Wkv_r == mb * (xb[0:1, :] @ Wkv_r)
            root_row = jnp.dot(xb[0:1, :], wkv_r,
                               preferred_element_type=jnp.float32)           # (1, 2H)
            kv_ref[b] = (kv_x + mb * root_row).astype(jnp.bfloat16)

    # ---- attention for this query tile ----
    wq = wq_ref[...]
    for b in range(TB):
        x_q = xq_ref[b]                                          # (TQ, H) bf16
        m_q = mq_ref[b]                                          # (TQ, 1) f32
        q = jnp.dot(x_q, wq,
                    preferred_element_type=jnp.float32).astype(jnp.bfloat16)
        kvb = kv_ref[b]                                          # (L, 2H) bf16
        for h in range(n_head):                                  # static head loop
            qh = q[:, h * d:(h + 1) * d]                         # (TQ, d)
            kh = kvb[:, h * d:(h + 1) * d]                       # (L, d)
            vh = kvb[:, H + h * d:H + (h + 1) * d]               # (L, d)

            # attn[q_pos, k_pos] = qh . kh   (1/scale already folded into Wq)
            attn = jax.lax.dot_general(
                qh, kh, dimension_numbers=(((1,), (1,)), ((), ())),
                preferred_element_type=jnp.float32)              # (TQ, L)

            # masked_fill(attn == 0, -1e20) + softmax on valid query rows;
            # invalid query rows keep the raw scores (as in the original code).
            masked = jnp.where(attn == 0.0, jnp.float32(-1e20), attn)
            mmax = jnp.max(masked, axis=-1, keepdims=True)
            ex = jnp.exp(masked - mmax)
            inv = pl.reciprocal(jnp.sum(ex, axis=-1, keepdims=True), approx=True)
            sm = ex * inv
            attn = jnp.where(m_q > 0.0, sm, attn)                # (TQ, L)

            oh = jnp.dot(attn.astype(jnp.bfloat16), vh,
                         preferred_element_type=jnp.float32)     # (TQ, d)
            acc_ref[b, :, h * d:(h + 1) * d] = oh

    out = acc_ref[...]
    o_ref[...] = jnp.where(out >= 0.0, out, neg_slope * out).astype(o_ref.dtype)


def _pick_block_q(seq_len):
    # largest multiple-of-8 tile (<=256) that divides L; tiny/odd L -> whole sequence.
    for cand in (256, 128, 64, 32, 16, 8):
        if cand <= seq_len and seq_len % cand == 0:
            return cand
    return seq_len


def _pick_block_b(batch, seq_len):
    # group several batch elements per grid step when sequences are short,
    # to amortize per-step overhead and resident-weight reuse.
    cap = max(1, 64 // max(seq_len, 1))
    tb = min(batch, cap)
    while tb > 1 and batch % tb != 0:
        tb -= 1
    return max(tb, 1)


def multi_head_attn_root_enhance(x, mask, wq, wkv, *, n_head, attn_scale=False):
    """x: (B, L, H) f32; mask: (B, L) {0,1}; wq: (H, H); wkv: (2H, 2H)."""
    B, L, H = x.shape
    assert H % n_head == 0
    scale = math.sqrt(H // n_head) if attn_scale else 1.0

    mask_f = mask.astype(jnp.float32).reshape(B, L, 1)
    wq_t = wq.T
    if scale != 1.0:
        wq_t = wq_t * jnp.float32(1.0 / scale)     # fold 1/scale into the Q projection
    wq_bf = wq_t.astype(jnp.bfloat16)
    wkv_bf = wkv.T.astype(jnp.bfloat16)
    x_bf = x.astype(jnp.bfloat16)                  # zero padding rows stay exactly 0

    tq = _pick_block_q(L)
    tb = _pick_block_b(B, L)
    grid = (B // tb, L // tq)

    kernel = functools.partial(_mha_root_enhance_kernel,
                               n_head=n_head, neg_slope=0.01)

    return pl.pallas_call(
        kernel,
        out_shape=jax.ShapeDtypeStruct((B, L, H), x.dtype),
        grid_spec=pltpu.PrefetchScalarGridSpec(
            num_scalar_prefetch=0,
            grid=grid,
            in_specs=[
                pl.BlockSpec((tb, L, H), lambda b, q: (b, 0, 0)),    # x, full seq (K/V+root)
                pl.BlockSpec((tb, tq, H), lambda b, q: (b, q, 0)),   # x, query tile (Q)
                pl.BlockSpec((tb, L, 1), lambda b, q: (b, 0, 0)),    # mask, full seq
                pl.BlockSpec((tb, tq, 1), lambda b, q: (b, q, 0)),   # mask, query tile
                pl.BlockSpec((H, H), lambda b, q: (0, 0)),           # Wq^T (resident)
                pl.BlockSpec((2 * H, 2 * H), lambda b, q: (0, 0)),   # Wkv^T (resident)
            ],
            out_specs=pl.BlockSpec((tb, tq, H), lambda b, q: (b, q, 0)),
            scratch_shapes=[
                pltpu.VMEM((tb, L, 2 * H), jnp.bfloat16),  # K/V, persists across q tiles
                pltpu.VMEM((tb, tq, H), jnp.float32),      # per-head output slab
            ],
        ),
        compiler_params=pltpu.CompilerParams(
            # the query-tile axis carries the K/V scratch -> "arbitrary"
            dimension_semantics=("parallel", "arbitrary"),
            vmem_limit_bytes=32 * 1024 * 1024,
        ),
    )(x_bf, x_bf, mask_f, mask_f, wq_bf, wkv_bf)


def _reference(x, mask, wq, wkv, n_head, attn_scale=False):
    """Pure-JAX f32 replica of the PyTorch forward (eval mode)."""
    B, L, H = x.shape
    d = H // n_head
    scale = math.sqrt(d) if attn_scale else 1.0
    root = mask[:, :, None] * x[:, 0:1, :]
    q = x @ wq.T
    kv = jnp.concatenate([x, root], axis=-1) @ wkv.T
    k, v = kv[..., :H], kv[..., H:]
    qh = q.reshape(B, L, n_head, d).transpose(0, 2, 1, 3)
    kh = k.reshape(B, L, n_head, d).transpose(0, 2, 3, 1)
    vh = v.reshape(B, L, n_head, d).transpose(0, 2, 1, 3)
    attn = jnp.matmul(qh, kh) / scale
    masked = jnp.where(attn == 0.0, -1e20, attn)
    sm = jax.nn.softmax(masked, axis=-1)
    attn = jnp.where(mask[:, None, :, None] > 0, sm, attn)
    out = jnp.matmul(attn, vh).transpose(0, 2, 1, 3).reshape(B, L, H)
    return jnp.where(out >= 0.0, out, 0.01 * out)


if __name__ == "__main__":
    B, L, H, N_HEAD = 2, 8, 32, 4

    key = jax.random.PRNGKey(0)
    k_x, k_wq, k_wkv = jax.random.split(key, 3)

    # Valid lengths per batch; padded positions are zero embeddings (as the
    # original module's `attn == 0.0` masking trick assumes).
    lengths = jnp.array([8, 5], dtype=jnp.int32)
    pos = jnp.arange(L)[None, :]
    mask = (pos < lengths[:, None]).astype(jnp.float32)            # (B, L)

    x = jax.random.normal(k_x, (B, L, H), dtype=jnp.float32)
    x = x * mask[:, :, None]                                       # zero padded rows

    # Deterministic nn.Linear-style uniform(-1/sqrt(fan_in), +...) weights.
    bq = 1.0 / math.sqrt(H)
    wq = jax.random.uniform(k_wq, (H, H), jnp.float32, -bq, bq)          # q_linear.weight
    bkv = 1.0 / math.sqrt(2 * H)
    wkv = jax.random.uniform(k_wkv, (2 * H, 2 * H), jnp.float32, -bkv, bkv)  # kv_linear.weight

    out = multi_head_attn_root_enhance(x, mask, wq, wkv, n_head=N_HEAD)
    out = jax.block_until_ready(out)
    assert out.shape == (B, L, H) and out.dtype == jnp.float32

    # Sanity-check against the f32 reference (bf16 MXU operands -> loose tolerance).
    ref = _reference(x, mask, wq, wkv, N_HEAD)
    assert bool(jnp.allclose(out, ref, atol=1e-1, rtol=1e-1)), (
        "max abs err = %f" % float(jnp.max(jnp.abs(out - ref))))

    print("KERNEL_OK")
</pallas_src>

<mosaic_0001>
module attributes {stable_mosaic.version = 11 : i64} {
  func.func @_mha_root_enhance_kernel(%arg0: i32, %arg1: i32, %arg2: memref<2x8x32xbf16, #tpu.memory_space<vmem>>, %arg3: memref<2x8x32xbf16, #tpu.memory_space<vmem>>, %arg4: memref<2x8x1xf32, #tpu.memory_space<vmem>>, %arg5: memref<2x8x1xf32, #tpu.memory_space<vmem>>, %arg6: memref<32x32xbf16, #tpu.memory_space<vmem>>, %arg7: memref<64x64xbf16, #tpu.memory_space<vmem>>, %arg8: memref<2x8x32xf32, #tpu.memory_space<vmem>>, %arg9: memref<2x8x64xbf16, #tpu.memory_space<vmem>>, %arg10: memref<2x8x32xf32, #tpu.memory_space<vmem>>) attributes {dimension_semantics = [#tpu.dimension_semantics<parallel>, #tpu.dimension_semantics<arbitrary>], iteration_bounds = array<i64: 1, 1>, scalar_prefetch = 0 : i64, scratch_operands = 2 : i64, tpu.core_type = #tpu.core_type<tc>, window_params = [{transform_indices = @transform_0, window_bounds = array<i64: 2, 8, 32>}, {transform_indices = @transform_1, window_bounds = array<i64: 2, 8, 32>}, {transform_indices = @transform_2, window_bounds = array<i64: 2, 8, 1>}, {transform_indices = @transform_3, window_bounds = array<i64: 2, 8, 1>}, {pipeline_mode = #tpu.pipeline_mode<synchronous>, transform_indices = @transform_4, window_bounds = array<i64: 32, 32>}, {pipeline_mode = #tpu.pipeline_mode<synchronous>, transform_indices = @transform_5, window_bounds = array<i64: 64, 64>}, {transform_indices = @transform_6, window_bounds = array<i64: 2, 8, 32>}]} {
    %c0_i32 = arith.constant 0 : i32
    %0 = arith.cmpi eq, %arg1, %c0_i32 : i32
    %1 = arith.extui %0 : i1 to i32
    %c0_i32_0 = arith.constant 0 : i32
    %2 = arith.cmpi ne, %1, %c0_i32_0 : i32
    scf.if %2 {
      %c0_105 = arith.constant 0 : index
      %c0_106 = arith.constant 0 : index
      %251 = vector.load %arg7[%c0_105, %c0_106] : memref<64x64xbf16, #tpu.memory_space<vmem>>, vector<32x64xbf16>
      %c32 = arith.constant 32 : index
      %c0_107 = arith.constant 0 : index
      %252 = vector.load %arg7[%c32, %c0_107] : memref<64x64xbf16, #tpu.memory_space<vmem>>, vector<32x64xbf16>
      %c0_108 = arith.constant 0 : index
      %c0_109 = arith.constant 0 : index
      %c0_110 = arith.constant 0 : index
      %253 = vector.load %arg2[%c0_108, %c0_109, %c0_110] : memref<2x8x32xbf16, #tpu.memory_space<vmem>>, vector<1x8x32xbf16>
      %254 = vector.shape_cast %253 : vector<1x8x32xbf16> to vector<8x32xbf16>
      %c0_111 = arith.constant 0 : index
      %c0_112 = arith.constant 0 : index
      %c0_113 = arith.constant 0 : index
      %255 = vector.load %arg4[%c0_111, %c0_112, %c0_113] : memref<2x8x1xf32, #tpu.memory_space<vmem>>, vector<1x8x1xf32>
      %256 = vector.shape_cast %255 : vector<1x8x1xf32> to vector<8x1xf32>
      %cst_114 = arith.constant dense<0.000000e+00> : vector<8x64xf32>
      %257 = tpu.matmul %254, %251, %cst_114 {dimension_numbers = #tpu.dot_dimension_numbers<[1], [0], [0], [1], [0, 0, 1, 1], [], []>} : vector<8x32xbf16>, vector<32x64xbf16>, vector<8x64xf32> -> vector<8x64xf32>
      %258 = vector.extract_strided_slice %254 {offsets = [0, 0], sizes = [1, 32], strides = [1, 1]} : vector<8x32xbf16> to vector<1x32xbf16>
      %cst_115 = arith.constant dense<0.000000e+00> : vector<1x64xf32>
      %259 = tpu.matmul %258, %252, %cst_115 {dimension_numbers = #tpu.dot_dimension_numbers<[1], [0], [0], [1], [0, 0, 1, 1], [], []>} : vector<1x32xbf16>, vector<32x64xbf16>, vector<1x64xf32> -> vector<1x64xf32>
      %260 = vector.broadcast %256 : vector<8x1xf32> to vector<8x64xf32>
      %261 = vector.broadcast %259 : vector<1x64xf32> to vector<8x64xf32>
      %262 = arith.mulf %260, %261 : vector<8x64xf32>
      %263 = arith.addf %257, %262 : vector<8x64xf32>
      %264 = arith.truncf %263 : vector<8x64xf32> to vector<8x64xbf16>
      %c0_116 = arith.constant 0 : index
      %c0_117 = arith.constant 0 : index
      %c0_118 = arith.constant 0 : index
      %265 = vector.load %arg9[%c0_116, %c0_117, %c0_118] : memref<2x8x64xbf16, #tpu.memory_space<vmem>>, vector<1x8x64xbf16>
      %266 = vector.shape_cast %265 : vector<1x8x64xbf16> to vector<8x64xbf16>
      %267 = vector.shape_cast %264 : vector<8x64xbf16> to vector<1x8x64xbf16>
      tpu.vector_store %arg9[%c0_116, %c0_117, %c0_118], %267 {strides = array<i32>} : memref<2x8x64xbf16, #tpu.memory_space<vmem>>, vector<1x8x64xbf16>,
      %c1_119 = arith.constant 1 : index
      %c0_120 = arith.constant 0 : index
      %c0_121 = arith.constant 0 : index
      %268 = vector.load %arg2[%c1_119, %c0_120, %c0_121] : memref<2x8x32xbf16, #tpu.memory_space<vmem>>, vector<1x8x32xbf16>
      %269 = vector.shape_cast %268 : vector<1x8x32xbf16> to vector<8x32xbf16>
      %c1_122 = arith.constant 1 : index
      %c0_123 = arith.constant 0 : index
      %c0_124 = arith.constant 0 : index
      %270 = vector.load %arg4[%c1_122, %c0_123, %c0_124] : memref<2x8x1xf32, #tpu.memory_space<vmem>>, vector<1x8x1xf32>
      %271 = vector.shape_cast %270 : vector<1x8x1xf32> to vector<8x1xf32>
      %cst_125 = arith.constant dense<0.000000e+00> : vector<8x64xf32>
      %272 = tpu.matmul %269, %251, %cst_125 {dimension_numbers = #tpu.dot_dimension_numbers<[1], [0], [0], [1], [0, 0, 1, 1], [], []>} : vector<8x32xbf16>, vector<32x64xbf16>, vector<8x64xf32> -> vector<8x64xf32>
      %273 = vector.extract_strided_slice %269 {offsets = [0, 0], sizes = [1, 32], strides = [1, 1]} : vector<8x32xbf16> to vector<1x32xbf16>
      %cst_126 = arith.constant dense<0.000000e+00> : vector<1x64xf32>
      %274 = tpu.matmul %273, %252, %cst_126 {dimension_numbers = #tpu.dot_dimension_numbers<[1], [0], [0], [1], [0, 0, 1, 1], [], []>} : vector<1x32xbf16>, vector<32x64xbf16>, vector<1x64xf32> -> vector<1x64xf32>
      %275 = vector.broadcast %271 : vector<8x1xf32> to vector<8x64xf32>
      %276 = vector.broadcast %274 : vector<1x64xf32> to vector<8x64xf32>
      %277 = arith.mulf %275, %276 : vector<8x64xf32>
      %278 = arith.addf %272, %277 : vector<8x64xf32>
      %279 = arith.truncf %278 : vector<8x64xf32> to vector<8x64xbf16>
      %c1_127 = arith.constant 1 : index
      %c0_128 = arith.constant 0 : index
      %c0_129 = arith.constant 0 : index
      %280 = vector.load %arg9[%c1_127, %c0_128, %c0_129] : memref<2x8x64xbf16, #tpu.memory_space<vmem>>, vector<1x8x64xbf16>
      %281 = vector.shape_cast %280 : vector<1x8x64xbf16> to vector<8x64xbf16>
      %282 = vector.shape_cast %279 : vector<8x64xbf16> to vector<1x8x64xbf16>
      tpu.vector_store %arg9[%c1_127, %c0_128, %c0_129], %282 {strides = array<i32>} : memref<2x8x64xbf16, #tpu.memory_space<vmem>>, vector<1x8x64xbf16>,
    } else {
    }
    %c0 = arith.constant 0 : index
    %c0_1 = arith.constant 0 : index
    %3 = vector.load %arg6[%c0, %c0_1] : memref<32x32xbf16, #tpu.memory_space<vmem>>, vector<32x32xbf16>
    %c0_2 = arith.constant 0 : index
    %c0_3 = arith.constant 0 : index
    %c0_4 = arith.constant 0 : index
    %4 = vector.load %arg3[%c0_2, %c0_3, %c0_4] : memref<2x8x32xbf16, #tpu.memory_space<vmem>>, vector<1x8x32xbf16>
    %5 = vector.shape_cast %4 : vector<1x8x32xbf16> to vector<8x32xbf16>
    %c0_5 = arith.constant 0 : index
    %c0_6 = arith.constant 0 : index
    %c0_7 = arith.constant 0 : index
    %6 = vector.load %arg5[%c0_5, %c0_6, %c0_7] : memref<2x8x1xf32, #tpu.memory_space<vmem>>, vector<1x8x1xf32>
    %7 = vector.shape_cast %6 : vector<1x8x1xf32> to vector<8x1xf32>
    %cst = arith.constant dense<0.000000e+00> : vector<8x32xf32>
    %8 = tpu.matmul %5, %3, %cst {dimension_numbers = #tpu.dot_dimension_numbers<[1], [0], [0], [1], [0, 0, 1, 1], [], []>} : vector<8x32xbf16>, vector<32x32xbf16>, vector<8x32xf32> -> vector<8x32xf32>
    %9 = arith.truncf %8 : vector<8x32xf32> to vector<8x32xbf16>
    %c0_8 = arith.constant 0 : index
    %c0_9 = arith.constant 0 : index
    %c0_10 = arith.constant 0 : index
    %10 = vector.load %arg9[%c0_8, %c0_9, %c0_10] : memref<2x8x64xbf16, #tpu.memory_space<vmem>>, vector<1x8x64xbf16>
    %11 = vector.shape_cast %10 : vector<1x8x64xbf16> to vector<8x64xbf16>
    %12 = vector.extract_strided_slice %9 {offsets = [0, 0], sizes = [8, 8], strides = [1, 1]} : vector<8x32xbf16> to vector<8x8xbf16>
    %13 = vector.extract_strided_slice %11 {offsets = [0, 0], sizes = [8, 8], strides = [1, 1]} : vector<8x64xbf16> to vector<8x8xbf16>
    %14 = vector.extract_strided_slice %11 {offsets = [0, 32], sizes = [8, 8], strides = [1, 1]} : vector<8x64xbf16> to vector<8x8xbf16>
    %cst_11 = arith.constant dense<0.000000e+00> : vector<8x8xf32>
    %15 = tpu.matmul %12, %13, %cst_11 {dimension_numbers = #tpu.dot_dimension_numbers<[1], [1], [0], [0], [0, 0, 1, 0], [], []>} : vector<8x8xbf16>, vector<8x8xbf16>, vector<8x8xf32> -> vector<8x8xf32>
    %cst_12 = arith.constant 0.000000e+00 : f32
    %16 = vector.broadcast %cst_12 : f32 to vector<8x8xf32>
    %17 = arith.cmpf oeq, %15, %16 : vector<8x8xf32>
    %cst_13 = arith.constant -1.000000e+20 : f32
    %18 = vector.broadcast %cst_13 : f32 to vector<8x8xf32>
    %19 = arith.select %17, %18, %15 : vector<8x8xi1>, vector<8x8xf32>
    %cst_14 = arith.constant dense<0xFF800000> : vector<8xf32>
    %20 = vector.multi_reduction <maximumf>, %19, %cst_14 [1] : vector<8x8xf32> to vector<8xf32>
    %21 = vector.shape_cast %20 : vector<8xf32> to vector<8x1xf32>
    %22 = vector.broadcast %21 : vector<8x1xf32> to vector<8x8xf32>
    %23 = arith.subf %19, %22 : vector<8x8xf32>
    %24 = math.exp %23 : vector<8x8xf32>
    %cst_15 = arith.constant dense<0.000000e+00> : vector<8xf32>
    %25 = vector.multi_reduction <add>, %24, %cst_15 [1] : vector<8x8xf32> to vector<8xf32>
    %26 = vector.shape_cast %25 : vector<8xf32> to vector<8x1xf32>
    %27 = tpu.reciprocal %26 {approx = true} : vector<8x1xf32> -> vector<8x1xf32>
    %28 = vector.broadcast %27 : vector<8x1xf32> to vector<8x8xf32>
    %29 = arith.mulf %24, %28 : vector<8x8xf32>
    %cst_16 = arith.constant 0.000000e+00 : f32
    %30 = vector.broadcast %cst_16 : f32 to vector<8x1xf32>
    %31 = arith.cmpf ogt, %7, %30 : vector<8x1xf32>
    %32 = vector.shape_cast %31 : vector<8x1xi1> to vector<8x1xi1>
    %33 = vector.broadcast %32 : vector<8x1xi1> to vector<8x8xi1>
    %34 = arith.select %33, %29, %15 : vector<8x8xi1>, vector<8x8xf32>
    %35 = arith.truncf %34 : vector<8x8xf32> to vector<8x8xbf16>
    %cst_17 = arith.constant dense<0.000000e+00> : vector<8x8xf32>
    %36 = tpu.matmul %35, %14, %cst_17 {dimension_numbers = #tpu.dot_dimension_numbers<[1], [0], [0], [1], [0, 0, 1, 1], [], []>} : vector<8x8xbf16>, vector<8x8xbf16>, vector<8x8xf32> -> vector<8x8xf32>
    %c0_18 = arith.constant 0 : index
    %c0_19 = arith.constant 0 : index
    %c0_20 = arith.constant 0 : index
    %37 = vector.load %arg10[%c0_18, %c0_19, %c0_20] : memref<2x8x32xf32, #tpu.memory_space<vmem>>, vector<1x8x8xf32>
    %38 = vector.shape_cast %37 : vector<1x8x8xf32> to vector<8x8xf32>
    %39 = vector.shape_cast %36 : vector<8x8xf32> to vector<1x8x8xf32>
    tpu.vector_store %arg10[%c0_18, %c0_19, %c0_20], %39 {strides = array<i32>} : memref<2x8x32xf32, #tpu.memory_space<vmem>>, vector<1x8x8xf32>,
    %40 = vector.extract_strided_slice %9 {offsets = [0, 8], sizes = [8, 8], strides = [1, 1]} : vector<8x32xbf16> to vector<8x8xbf16>
    %41 = vector.extract_strided_slice %11 {offsets = [0, 8], sizes = [8, 8], strides = [1, 1]} : vector<8x64xbf16> to vector<8x8xbf16>
    %42 = vector.extract_strided_slice %11 {offsets = [0, 40], sizes = [8, 8], strides = [1, 1]} : vector<8x64xbf16> to vector<8x8xbf16>
    %cst_21 = arith.constant dense<0.000000e+00> : vector<8x8xf32>
    %43 = tpu.matmul %40, %41, %cst_21 {dimension_numbers = #tpu.dot_dimension_numbers<[1], [1], [0], [0], [0, 0, 1, 0], [], []>} : vector<8x8xbf16>, vector<8x8xbf16>, vector<8x8xf32> -> vector<8x8xf32>
    %cst_22 = arith.constant 0.000000e+00 : f32
    %44 = vector.broadcast %cst_22 : f32 to vector<8x8xf32>
    %45 = arith.cmpf oeq, %43, %44 : vector<8x8xf32>
    %cst_23 = arith.constant -1.000000e+20 : f32
    %46 = vector.broadcast %cst_23 : f32 to vector<8x8xf32>
    %47 = arith.select %45, %46, %43 : vector<8x8xi1>, vector<8x8xf32>
    %cst_24 = arith.constant dense<0xFF800000> : vector<8xf32>
    %48 = vector.multi_reduction <maximumf>, %47, %cst_24 [1] : vector<8x8xf32> to vector<8xf32>
    %49 = vector.shape_cast %48 : vector<8xf32> to vector<8x1xf32>
    %50 = vector.broadcast %49 : vector<8x1xf32> to vector<8x8xf32>
    %51 = arith.subf %47, %50 : vector<8x8xf32>
    %52 = math.exp %51 : vector<8x8xf32>
    %cst_25 = arith.constant dense<0.000000e+00> : vector<8xf32>
    %53 = vector.multi_reduction <add>, %52, %cst_25 [1] : vector<8x8xf32> to vector<8xf32>
    %54 = vector.shape_cast %53 : vector<8xf32> to vector<8x1xf32>
    %55 = tpu.reciprocal %54 {approx = true} : vector<8x1xf32> -> vector<8x1xf32>
    %56 = vector.broadcast %55 : vector<8x1xf32> to vector<8x8xf32>
    %57 = arith.mulf %52, %56 : vector<8x8xf32>
    %cst_26 = arith.constant 0.000000e+00 : f32
    %58 = vector.broadcast %cst_26 : f32 to vector<8x1xf32>
    %59 = arith.cmpf ogt, %7, %58 : vector<8x1xf32>
    %60 = vector.shape_cast %59 : vector<8x1xi1> to vector<8x1xi1>
    %61 = vector.broadcast %60 : vector<8x1xi1> to vector<8x8xi1>
    %62 = arith.select %61, %57, %43 : vector<8x8xi1>, vector<8x8xf32>
    %63 = arith.truncf %62 : vector<8x8xf32> to vector<8x8xbf16>
    %cst_27 = arith.constant dense<0.000000e+00> : vector<8x8xf32>
    %64 = tpu.matmul %63, %42, %cst_27 {dimension_numbers = #tpu.dot_dimension_numbers<[1], [0], [0], [1], [0, 0, 1, 1], [], []>} : vector<8x8xbf16>, vector<8x8xbf16>, vector<8x8xf32> -> vector<8x8xf32>
    %c0_28 = arith.constant 0 : index
    %c0_29 = arith.constant 0 : index
    %c8 = arith.constant 8 : index
    %65 = vector.load %arg10[%c0_28, %c0_29, %c8] : memref<2x8x32xf32, #tpu.memory_space<vmem>>, vector<1x8x8xf32>
    %66 = vector.shape_cast %65 : vector<1x8x8xf32> to vector<8x8xf32>
    %67 = vector.shape_cast %64 : vector<8x8xf32> to vector<1x8x8xf32>
    tpu.vector_store %arg10[%c0_28, %c0_29, %c8], %67 {strides = array<i32>} : memref<2x8x32xf32, #tpu.memory_space<vmem>>, vector<1x8x8xf32>,
    %68 = vector.extract_strided_slice %9 {offsets = [0, 16], sizes = [8, 8], strides = [1, 1]} : vector<8x32xbf16> to vector<8x8xbf16>
    %69 = vector.extract_strided_slice %11 {offsets = [0, 16], sizes = [8, 8], strides = [1, 1]} : vector<8x64xbf16> to vector<8x8xbf16>
    %70 = vector.extract_strided_slice %11 {offsets = [0, 48], sizes = [8, 8], strides = [1, 1]} : vector<8x64xbf16> to vector<8x8xbf16>
    %cst_30 = arith.constant dense<0.000000e+00> : vector<8x8xf32>
    %71 = tpu.matmul %68, %69, %cst_30 {dimension_numbers = #tpu.dot_dimension_numbers<[1], [1], [0], [0], [0, 0, 1, 0], [], []>} : vector<8x8xbf16>, vector<8x8xbf16>, vector<8x8xf32> -> vector<8x8xf32>
    %cst_31 = arith.constant 0.000000e+00 : f32
    %72 = vector.broadcast %cst_31 : f32 to vector<8x8xf32>
    %73 = arith.cmpf oeq, %71, %72 : vector<8x8xf32>
    %cst_32 = arith.constant -1.000000e+20 : f32
    %74 = vector.broadcast %cst_32 : f32 to vector<8x8xf32>
    %75 = arith.select %73, %74, %71 : vector<8x8xi1>, vector<8x8xf32>
    %cst_33 = arith.constant dense<0xFF800000> : vector<8xf32>
    %76 = vector.multi_reduction <maximumf>, %75, %cst_33 [1] : vector<8x8xf32> to vector<8xf32>
    %77 = vector.shape_cast %76 : vector<8xf32> to vector<8x1xf32>
    %78 = vector.broadcast %77 : vector<8x1xf32> to vector<8x8xf32>
    %79 = arith.subf %75, %78 : vector<8x8xf32>
    %80 = math.exp %79 : vector<8x8xf32>
    %cst_34 = arith.constant dense<0.000000e+00> : vector<8xf32>
    %81 = vector.multi_reduction <add>, %80, %cst_34 [1] : vector<8x8xf32> to vector<8xf32>
    %82 = vector.shape_cast %81 : vector<8xf32> to vector<8x1xf32>
    %83 = tpu.reciprocal %82 {approx = true} : vector<8x1xf32> -> vector<8x1xf32>
    %84 = vector.broadcast %83 : vector<8x1xf32> to vector<8x8xf32>
    %85 = arith.mulf %80, %84 : vector<8x8xf32>
    %cst_35 = arith.constant 0.000000e+00 : f32
    %86 = vector.broadcast %cst_35 : f32 to vector<8x1xf32>
    %87 = arith.cmpf ogt, %7, %86 : vector<8x1xf32>
    %88 = vector.shape_cast %87 : vector<8x1xi1> to vector<8x1xi1>
    %89 = vector.broadcast %88 : vector<8x1xi1> to vector<8x8xi1>
    %90 = arith.select %89, %85, %71 : vector<8x8xi1>, vector<8x8xf32>
    %91 = arith.truncf %90 : vector<8x8xf32> to vector<8x8xbf16>
    %cst_36 = arith.constant dense<0.000000e+00> : vector<8x8xf32>
    %92 = tpu.matmul %91, %70, %cst_36 {dimension_numbers = #tpu.dot_dimension_numbers<[1], [0], [0], [1], [0, 0, 1, 1], [], []>} : vector<8x8xbf16>, vector<8x8xbf16>, vector<8x8xf32> -> vector<8x8xf32>
    %c0_37 = arith.constant 0 : index
    %c0_38 = arith.constant 0 : index
    %c16 = arith.constant 16 : index
    %93 = vector.load %arg10[%c0_37, %c0_38, %c16] : memref<2x8x32xf32, #tpu.memory_space<vmem>>, vector<1x8x8xf32>
    %94 = vector.shape_cast %93 : vector<1x8x8xf32> to vector<8x8xf32>
    %95 = vector.shape_cast %92 : vector<8x8xf32> to vector<1x8x8xf32>
    tpu.vector_store %arg10[%c0_37, %c0_38, %c16], %95 {strides = array<i32>} : memref<2x8x32xf32, #tpu.memory_space<vmem>>, vector<1x8x8xf32>,
    %96 = vector.extract_strided_slice %9 {offsets = [0, 24], sizes = [8, 8], strides = [1, 1]} : vector<8x32xbf16> to vector<8x8xbf16>
    %97 = vector.extract_strided_slice %11 {offsets = [0, 24], sizes = [8, 8], strides = [1, 1]} : vector<8x64xbf16> to vector<8x8xbf16>
    %98 = vector.extract_strided_slice %11 {offsets = [0, 56], sizes = [8, 8], strides = [1, 1]} : vector<8x64xbf16> to vector<8x8xbf16>
    %cst_39 = arith.constant dense<0.000000e+00> : vector<8x8xf32>
    %99 = tpu.matmul %96, %97, %cst_39 {dimension_numbers = #tpu.dot_dimension_numbers<[1], [1], [0], [0], [0, 0, 1, 0], [], []>} : vector<8x8xbf16>, vector<8x8xbf16>, vector<8x8xf32> -> vector<8x8xf32>
    %cst_40 = arith.constant 0.000000e+00 : f32
    %100 = vector.broadcast %cst_40 : f32 to vector<8x8xf32>
    %101 = arith.cmpf oeq, %99, %100 : vector<8x8xf32>
    %cst_41 = arith.constant -1.000000e+20 : f32
    %102 = vector.broadcast %cst_41 : f32 to vector<8x8xf32>
    %103 = arith.select %101, %102, %99 : vector<8x8xi1>, vector<8x8xf32>
    %cst_42 = arith.constant dense<0xFF800000> : vector<8xf32>
    %104 = vector.multi_reduction <maximumf>, %103, %cst_42 [1] : vector<8x8xf32> to vector<8xf32>
    %105 = vector.shape_cast %104 : vector<8xf32> to vector<8x1xf32>
    %106 = vector.broadcast %105 : vector<8x1xf32> to vector<8x8xf32>
    %107 = arith.subf %103, %106 : vector<8x8xf32>
    %108 = math.exp %107 : vector<8x8xf32>
    %cst_43 = arith.constant dense<0.000000e+00> : vector<8xf32>
    %109 = vector.multi_reduction <add>, %108, %cst_43 [1] : vector<8x8xf32> to vector<8xf32>
    %110 = vector.shape_cast %109 : vector<8xf32> to vector<8x1xf32>
    %111 = tpu.reciprocal %110 {approx = true} : vector<8x1xf32> -> vector<8x1xf32>
    %112 = vector.broadcast %111 : vector<8x1xf32> to vector<8x8xf32>
    %113 = arith.mulf %108, %112 : vector<8x8xf32>
    %cst_44 = arith.constant 0.000000e+00 : f32
    %114 = vector.broadcast %cst_44 : f32 to vector<8x1xf32>
    %115 = arith.cmpf ogt, %7, %114 : vector<8x1xf32>
    %116 = vector.shape_cast %115 : vector<8x1xi1> to vector<8x1xi1>
    %117 = vector.broadcast %116 : vector<8x1xi1> to vector<8x8xi1>
    %118 = arith.select %117, %113, %99 : vector<8x8xi1>, vector<8x8xf32>
    %119 = arith.truncf %118 : vector<8x8xf32> to vector<8x8xbf16>
    %cst_45 = arith.constant dense<0.000000e+00> : vector<8x8xf32>
    %120 = tpu.matmul %119, %98, %cst_45 {dimension_numbers = #tpu.dot_dimension_numbers<[1], [0], [0], [1], [0, 0, 1, 1], [], []>} : vector<8x8xbf16>, vector<8x8xbf16>, vector<8x8xf32> -> vector<8x8xf32>
    %c0_46 = arith.constant 0 : index
    %c0_47 = arith.constant 0 : index
    %c24 = arith.constant 24 : index
    %121 = vector.load %arg10[%c0_46, %c0_47, %c24] : memref<2x8x32xf32, #tpu.memory_space<vmem>>, vector<1x8x8xf32>
    %122 = vector.shape_cast %121 : vector<1x8x8xf32> to vector<8x8xf32>
    %123 = vector.shape_cast %120 : vector<8x8xf32> to vector<1x8x8xf32>
    tpu.vector_store %arg10[%c0_46, %c0_47, %c24], %123 {strides = array<i32>} : memref<2x8x32xf32, #tpu.memory_space<vmem>>, vector<1x8x8xf32>,
    %c1 = arith.constant 1 : index
    %c0_48 = arith.constant 0 : index
    %c0_49 = arith.constant 0 : index
    %124 = vector.load %arg3[%c1, %c0_48, %c0_49] : memref<2x8x32xbf16, #tpu.memory_space<vmem>>, vector<1x8x32xbf16>
    %125 = vector.shape_cast %124 : vector<1x8x32xbf16> to vector<8x32xbf16>
    %c1_50 = arith.constant 1 : index
    %c0_51 = arith.constant 0 : index
    %c0_52 = arith.constant 0 : index
    %126 = vector.load %arg5[%c1_50, %c0_51, %c0_52] : memref<2x8x1xf32, #tpu.memory_space<vmem>>, vector<1x8x1xf32>
    %127 = vector.shape_cast %126 : vector<1x8x1xf32> to vector<8x1xf32>
    %cst_53 = arith.constant dense<0.000000e+00> : vector<8x32xf32>
    %128 = tpu.matmul %125, %3, %cst_53 {dimension_numbers = #tpu.dot_dimension_numbers<[1], [0], [0], [1], [0, 0, 1, 1], [], []>} : vector<8x32xbf16>, vector<32x32xbf16>, vector<8x32xf32> -> vector<8x32xf32>
    %129 = arith.truncf %128 : vector<8x32xf32> to vector<8x32xbf16>
    %c1_54 = arith.constant 1 : index
    %c0_55 = arith.constant 0 : index
    %c0_56 = arith.constant 0 : index
    %130 = vector.load %arg9[%c1_54, %c0_55, %c0_56] : memref<2x8x64xbf16, #tpu.memory_space<vmem>>, vector<1x8x64xbf16>
    %131 = vector.shape_cast %130 : vector<1x8x64xbf16> to vector<8x64xbf16>
    %132 = vector.extract_strided_slice %129 {offsets = [0, 0], sizes = [8, 8], strides = [1, 1]} : vector<8x32xbf16> to vector<8x8xbf16>
    %133 = vector.extract_strided_slice %131 {offsets = [0, 0], sizes = [8, 8], strides = [1, 1]} : vector<8x64xbf16> to vector<8x8xbf16>
    %134 = vector.extract_strided_slice %131 {offsets = [0, 32], sizes = [8, 8], strides = [1, 1]} : vector<8x64xbf16> to vector<8x8xbf16>
    %cst_57 = arith.constant dense<0.000000e+00> : vector<8x8xf32>
    %135 = tpu.matmul %132, %133, %cst_57 {dimension_numbers = #tpu.dot_dimension_numbers<[1], [1], [0], [0], [0, 0, 1, 0], [], []>} : vector<8x8xbf16>, vector<8x8xbf16>, vector<8x8xf32> -> vector<8x8xf32>
    %cst_58 = arith.constant 0.000000e+00 : f32
    %136 = vector.broadcast %cst_58 : f32 to vector<8x8xf32>
    %137 = arith.cmpf oeq, %135, %136 : vector<8x8xf32>
    %cst_59 = arith.constant -1.000000e+20 : f32
    %138 = vector.broadcast %cst_59 : f32 to vector<8x8xf32>
    %139 = arith.select %137, %138, %135 : vector<8x8xi1>, vector<8x8xf32>
    %cst_60 = arith.constant dense<0xFF800000> : vector<8xf32>
    %140 = vector.multi_reduction <maximumf>, %139, %cst_60 [1] : vector<8x8xf32> to vector<8xf32>
    %141 = vector.shape_cast %140 : vector<8xf32> to vector<8x1xf32>
    %142 = vector.broadcast %141 : vector<8x1xf32> to vector<8x8xf32>
    %143 = arith.subf %139, %142 : vector<8x8xf32>
    %144 = math.exp %143 : vector<8x8xf32>
    %cst_61 = arith.constant dense<0.000000e+00> : vector<8xf32>
    %145 = vector.multi_reduction <add>, %144, %cst_61 [1] : vector<8x8xf32> to vector<8xf32>
    %146 = vector.shape_cast %145 : vector<8xf32> to vector<8x1xf32>
    %147 = tpu.reciprocal %146 {approx = true} : vector<8x1xf32> -> vector<8x1xf32>
    %148 = vector.broadcast %147 : vector<8x1xf32> to vector<8x8xf32>
    %149 = arith.mulf %144, %148 : vector<8x8xf32>
    %cst_62 = arith.constant 0.000000e+00 : f32
    %150 = vector.broadcast %cst_62 : f32 to vector<8x1xf32>
    %151 = arith.cmpf ogt, %127, %150 : vector<8x1xf32>
    %152 = vector.shape_cast %151 : vector<8x1xi1> to vector<8x1xi1>
    %153 = vector.broadcast %152 : vector<8x1xi1> to vector<8x8xi1>
    %154 = arith.select %153, %149, %135 : vector<8x8xi1>, vector<8x8xf32>
    %155 = arith.truncf %154 : vector<8x8xf32> to vector<8x8xbf16>
    %cst_63 = arith.constant dense<0.000000e+00> : vector<8x8xf32>
    %156 = tpu.matmul %155, %134, %cst_63 {dimension_numbers = #tpu.dot_dimension_numbers<[1], [0], [0], [1], [0, 0, 1, 1], [], []>} : vector<8x8xbf16>, vector<8x8xbf16>, vector<8x8xf32> -> vector<8x8xf32>
    %c1_64 = arith.constant 1 : index
    %c0_65 = arith.constant 0 : index
    %c0_66 = arith.constant 0 : index
    %157 = vector.load %arg10[%c1_64, %c0_65, %c0_66] : memref<2x8x32xf32, #tpu.memory_space<vmem>>, vector<1x8x8xf32>
    %158 = vector.shape_cast %157 : vector<1x8x8xf32> to vector<8x8xf32>
    %159 = vector.shape_cast %156 : vector<8x8xf32> to vector<1x8x8xf32>
    tpu.vector_store %arg10[%c1_64, %c0_65, %c0_66], %159 {strides = array<i32>} : memref<2x8x32xf32, #tpu.memory_space<vmem>>, vector<1x8x8xf32>,
    %160 = vector.extract_strided_slice %129 {offsets = [0, 8], sizes = [8, 8], strides = [1, 1]} : vector<8x32xbf16> to vector<8x8xbf16>
    %161 = vector.extract_strided_slice %131 {offsets = [0, 8], sizes = [8, 8], strides = [1, 1]} : vector<8x64xbf16> to vector<8x8xbf16>
    %162 = vector.extract_strided_slice %131 {offsets = [0, 40], sizes = [8, 8], strides = [1, 1]} : vector<8x64xbf16> to vector<8x8xbf16>
    %cst_67 = arith.constant dense<0.000000e+00> : vector<8x8xf32>
    %163 = tpu.matmul %160, %161, %cst_67 {dimension_numbers = #tpu.dot_dimension_numbers<[1], [1], [0], [0], [0, 0, 1, 0], [], []>} : vector<8x8xbf16>, vector<8x8xbf16>, vector<8x8xf32> -> vector<8x8xf32>
    %cst_68 = arith.constant 0.000000e+00 : f32
    %164 = vector.broadcast %cst_68 : f32 to vector<8x8xf32>
    %165 = arith.cmpf oeq, %163, %164 : vector<8x8xf32>
    %cst_69 = arith.constant -1.000000e+20 : f32
    %166 = vector.broadcast %cst_69 : f32 to vector<8x8xf32>
    %167 = arith.select %165, %166, %163 : vector<8x8xi1>, vector<8x8xf32>
    %cst_70 = arith.constant dense<0xFF800000> : vector<8xf32>
    %168 = vector.multi_reduction <maximumf>, %167, %cst_70 [1] : vector<8x8xf32> to vector<8xf32>
    %169 = vector.shape_cast %168 : vector<8xf32> to vector<8x1xf32>
    %170 = vector.broadcast %169 : vector<8x1xf32> to vector<8x8xf32>
    %171 = arith.subf %167, %170 : vector<8x8xf32>
    %172 = math.exp %171 : vector<8x8xf32>
    %cst_71 = arith.constant dense<0.000000e+00> : vector<8xf32>
    %173 = vector.multi_reduction <add>, %172, %cst_71 [1] : vector<8x8xf32> to vector<8xf32>
    %174 = vector.shape_cast %173 : vector<8xf32> to vector<8x1xf32>
    %175 = tpu.reciprocal %174 {approx = true} : vector<8x1xf32> -> vector<8x1xf32>
    %176 = vector.broadcast %175 : vector<8x1xf32> to vector<8x8xf32>
    %177 = arith.mulf %172, %176 : vector<8x8xf32>
    %cst_72 = arith.constant 0.000000e+00 : f32
    %178 = vector.broadcast %cst_72 : f32 to vector<8x1xf32>
    %179 = arith.cmpf ogt, %127, %178 : vector<8x1xf32>
    %180 = vector.shape_cast %179 : vector<8x1xi1> to vector<8x1xi1>
    %181 = vector.broadcast %180 : vector<8x1xi1> to vector<8x8xi1>
    %182 = arith.select %181, %177, %163 : vector<8x8xi1>, vector<8x8xf32>
    %183 = arith.truncf %182 : vector<8x8xf32> to vector<8x8xbf16>
    %cst_73 = arith.constant dense<0.000000e+00> : vector<8x8xf32>
    %184 = tpu.matmul %183, %162, %cst_73 {dimension_numbers = #tpu.dot_dimension_numbers<[1], [0], [0], [1], [0, 0, 1, 1], [], []>} : vector<8x8xbf16>, vector<8x8xbf16>, vector<8x8xf32> -> vector<8x8xf32>
    %c1_74 = arith.constant 1 : index
    %c0_75 = arith.constant 0 : index
    %c8_76 = arith.constant 8 : index
    %185 = vector.load %arg10[%c1_74, %c0_75, %c8_76] : memref<2x8x32xf32, #tpu.memory_space<vmem>>, vector<1x8x8xf32>
    %186 = vector.shape_cast %185 : vector<1x8x8xf32> to vector<8x8xf32>
    %187 = vector.shape_cast %184 : vector<8x8xf32> to vector<1x8x8xf32>
    tpu.vector_store %arg10[%c1_74, %c0_75, %c8_76], %187 {strides = array<i32>} : memref<2x8x32xf32, #tpu.memory_space<vmem>>, vector<1x8x8xf32>,
    %188 = vector.extract_strided_slice %129 {offsets = [0, 16], sizes = [8, 8], strides = [1, 1]} : vector<8x32xbf16> to vector<8x8xbf16>
    %189 = vector.extract_strided_slice %131 {offsets = [0, 16], sizes = [8, 8], strides = [1, 1]} : vector<8x64xbf16> to vector<8x8xbf16>
    %190 = vector.extract_strided_slice %131 {offsets = [0, 48], sizes = [8, 8], strides = [1, 1]} : vector<8x64xbf16> to vector<8x8xbf16>
    %cst_77 = arith.constant dense<0.000000e+00> : vector<8x8xf32>
    %191 = tpu.matmul %188, %189, %cst_77 {dimension_numbers = #tpu.dot_dimension_numbers<[1], [1], [0], [0], [0, 0, 1, 0], [], []>} : vector<8x8xbf16>, vector<8x8xbf16>, vector<8x8xf32> -> vector<8x8xf32>
    %cst_78 = arith.constant 0.000000e+00 : f32
    %192 = vector.broadcast %cst_78 : f32 to vector<8x8xf32>
    %193 = arith.cmpf oeq, %191, %192 : vector<8x8xf32>
    %cst_79 = arith.constant -1.000000e+20 : f32
    %194 = vector.broadcast %cst_79 : f32 to vector<8x8xf32>
    %195 = arith.select %193, %194, %191 : vector<8x8xi1>, vector<8x8xf32>
    %cst_80 = arith.constant dense<0xFF800000> : vector<8xf32>
    %196 = vector.multi_reduction <maximumf>, %195, %cst_80 [1] : vector<8x8xf32> to vector<8xf32>
    %197 = vector.shape_cast %196 : vector<8xf32> to vector<8x1xf32>
    %198 = vector.broadcast %197 : vector<8x1xf32> to vector<8x8xf32>
    %199 = arith.subf %195, %198 : vector<8x8xf32>
    %200 = math.exp %199 : vector<8x8xf32>
    %cst_81 = arith.constant dense<0.000000e+00> : vector<8xf32>
    %201 = vector.multi_reduction <add>, %200, %cst_81 [1] : vector<8x8xf32> to vector<8xf32>
    %202 = vector.shape_cast %201 : vector<8xf32> to vector<8x1xf32>
    %203 = tpu.reciprocal %202 {approx = true} : vector<8x1xf32> -> vector<8x1xf32>
    %204 = vector.broadcast %203 : vector<8x1xf32> to vector<8x8xf32>
    %205 = arith.mulf %200, %204 : vector<8x8xf32>
    %cst_82 = arith.constant 0.000000e+00 : f32
    %206 = vector.broadcast %cst_82 : f32 to vector<8x1xf32>
    %207 = arith.cmpf ogt, %127, %206 : vector<8x1xf32>
    %208 = vector.shape_cast %207 : vector<8x1xi1> to vector<8x1xi1>
    %209 = vector.broadcast %208 : vector<8x1xi1> to vector<8x8xi1>
    %210 = arith.select %209, %205, %191 : vector<8x8xi1>, vector<8x8xf32>
    %211 = arith.truncf %210 : vector<8x8xf32> to vector<8x8xbf16>
    %cst_83 = arith.constant dense<0.000000e+00> : vector<8x8xf32>
    %212 = tpu.matmul %211, %190, %cst_83 {dimension_numbers = #tpu.dot_dimension_numbers<[1], [0], [0], [1], [0, 0, 1, 1], [], []>} : vector<8x8xbf16>, vector<8x8xbf16>, vector<8x8xf32> -> vector<8x8xf32>
    %c1_84 = arith.constant 1 : index
    %c0_85 = arith.constant 0 : index
    %c16_86 = arith.constant 16 : index
    %213 = vector.load %arg10[%c1_84, %c0_85, %c16_86] : memref<2x8x32xf32, #tpu.memory_space<vmem>>, vector<1x8x8xf32>
    %214 = vector.shape_cast %213 : vector<1x8x8xf32> to vector<8x8xf32>
    %215 = vector.shape_cast %212 : vector<8x8xf32> to vector<1x8x8xf32>
    tpu.vector_store %arg10[%c1_84, %c0_85, %c16_86], %215 {strides = array<i32>} : memref<2x8x32xf32, #tpu.memory_space<vmem>>, vector<1x8x8xf32>,
    %216 = vector.extract_strided_slice %129 {offsets = [0, 24], sizes = [8, 8], strides = [1, 1]} : vector<8x32xbf16> to vector<8x8xbf16>
    %217 = vector.extract_strided_slice %131 {offsets = [0, 24], sizes = [8, 8], strides = [1, 1]} : vector<8x64xbf16> to vector<8x8xbf16>
    %218 = vector.extract_strided_slice %131 {offsets = [0, 56], sizes = [8, 8], strides = [1, 1]} : vector<8x64xbf16> to vector<8x8xbf16>
    %cst_87 = arith.constant dense<0.000000e+00> : vector<8x8xf32>
    %219 = tpu.matmul %216, %217, %cst_87 {dimension_numbers = #tpu.dot_dimension_numbers<[1], [1], [0], [0], [0, 0, 1, 0], [], []>} : vector<8x8xbf16>, vector<8x8xbf16>, vector<8x8xf32> -> vector<8x8xf32>
    %cst_88 = arith.constant 0.000000e+00 : f32
    %220 = vector.broadcast %cst_88 : f32 to vector<8x8xf32>
    %221 = arith.cmpf oeq, %219, %220 : vector<8x8xf32>
    %cst_89 = arith.constant -1.000000e+20 : f32
    %222 = vector.broadcast %cst_89 : f32 to vector<8x8xf32>
    %223 = arith.select %221, %222, %219 : vector<8x8xi1>, vector<8x8xf32>
    %cst_90 = arith.constant dense<0xFF800000> : vector<8xf32>
    %224 = vector.multi_reduction <maximumf>, %223, %cst_90 [1] : vector<8x8xf32> to vector<8xf32>
    %225 = vector.shape_cast %224 : vector<8xf32> to vector<8x1xf32>
    %226 = vector.broadcast %225 : vector<8x1xf32> to vector<8x8xf32>
    %227 = arith.subf %223, %226 : vector<8x8xf32>
    %228 = math.exp %227 : vector<8x8xf32>
    %cst_91 = arith.constant dense<0.000000e+00> : vector<8xf32>
    %229 = vector.multi_reduction <add>, %228, %cst_91 [1] : vector<8x8xf32> to vector<8xf32>
    %230 = vector.shape_cast %229 : vector<8xf32> to vector<8x1xf32>
    %231 = tpu.reciprocal %230 {approx = true} : vector<8x1xf32> -> vector<8x1xf32>
    %232 = vector.broadcast %231 : vector<8x1xf32> to vector<8x8xf32>
    %233 = arith.mulf %228, %232 : vector<8x8xf32>
    %cst_92 = arith.constant 0.000000e+00 : f32
    %234 = vector.broadcast %cst_92 : f32 to vector<8x1xf32>
    %235 = arith.cmpf ogt, %127, %234 : vector<8x1xf32>
    %236 = vector.shape_cast %235 : vector<8x1xi1> to vector<8x1xi1>
    %237 = vector.broadcast %236 : vector<8x1xi1> to vector<8x8xi1>
    %238 = arith.select %237, %233, %219 : vector<8x8xi1>, vector<8x8xf32>
    %239 = arith.truncf %238 : vector<8x8xf32> to vector<8x8xbf16>
    %cst_93 = arith.constant dense<0.000000e+00> : vector<8x8xf32>
    %240 = tpu.matmul %239, %218, %cst_93 {dimension_numbers = #tpu.dot_dimension_numbers<[1], [0], [0], [1], [0, 0, 1, 1], [], []>} : vector<8x8xbf16>, vector<8x8xbf16>, vector<8x8xf32> -> vector<8x8xf32>
    %c1_94 = arith.constant 1 : index
    %c0_95 = arith.constant 0 : index
    %c24_96 = arith.constant 24 : index
    %241 = vector.load %arg10[%c1_94, %c0_95, %c24_96] : memref<2x8x32xf32, #tpu.memory_space<vmem>>, vector<1x8x8xf32>
    %242 = vector.shape_cast %241 : vector<1x8x8xf32> to vector<8x8xf32>
    %243 = vector.shape_cast %240 : vector<8x8xf32> to vector<1x8x8xf32>
    tpu.vector_store %arg10[%c1_94, %c0_95, %c24_96], %243 {strides = array<i32>} : memref<2x8x32xf32, #tpu.memory_space<vmem>>, vector<1x8x8xf32>,
    %c0_97 = arith.constant 0 : index
    %c0_98 = arith.constant 0 : index
    %c0_99 = arith.constant 0 : index
    %244 = vector.load %arg10[%c0_97, %c0_98, %c0_99] : memref<2x8x32xf32, #tpu.memory_space<vmem>>, vector<2x8x32xf32>
    %cst_100 = arith.constant 0.000000e+00 : f32
    %245 = vector.broadcast %cst_100 : f32 to vector<2x8x32xf32>
    %246 = arith.cmpf oge, %244, %245 : vector<2x8x32xf32>
    %cst_101 = arith.constant 0.00999999977 : f32
    %247 = vector.broadcast %cst_101 : f32 to vector<2x8x32xf32>
    %248 = arith.mulf %247, %244 : vector<2x8x32xf32>
    %249 = arith.select %246, %244, %248 : vector<2x8x32xi1>, vector<2x8x32xf32>
    %c0_102 = arith.constant 0 : index
    %c0_103 = arith.constant 0 : index
    %c0_104 = arith.constant 0 : index
    %250 = vector.load %arg8[%c0_102, %c0_103, %c0_104] : memref<2x8x32xf32, #tpu.memory_space<vmem>>, vector<2x8x32xf32>
    tpu.vector_store %arg8[%c0_102, %c0_103, %c0_104], %249 {strides = array<i32>} : memref<2x8x32xf32, #tpu.memory_space<vmem>>, vector<2x8x32xf32>,
    return
  }
  func.func @transform_0(%arg0: i32, %arg1: i32) -> (i32, i32, i32) {
    %c0_i32 = arith.constant 0 : i32
    %c0_i32_0 = arith.constant 0 : i32
    %c0_i32_1 = arith.constant 0 : i32
    return %arg0, %c0_i32, %c0_i32_0 : i32, i32, i32
  }
  func.func @transform_1(%arg0: i32, %arg1: i32) -> (i32, i32, i32) {
    %c0_i32 = arith.constant 0 : i32
    %c0_i32_0 = arith.constant 0 : i32
    return %arg0, %arg1, %c0_i32 : i32, i32, i32
  }
  func.func @transform_2(%arg0: i32, %arg1: i32) -> (i32, i32, i32) {
    %c0_i32 = arith.constant 0 : i32
    %c0_i32_0 = arith.constant 0 : i32
    %c0_i32_1 = arith.constant 0 : i32
    return %arg0, %c0_i32, %c0_i32_0 : i32, i32, i32
  }
  func.func @transform_3(%arg0: i32, %arg1: i32) -> (i32, i32, i32) {
    %c0_i32 = arith.constant 0 : i32
    %c0_i32_0 = arith.constant 0 : i32
    return %arg0, %arg1, %c0_i32 : i32, i32, i32
  }
  func.func @transform_4(%arg0: i32, %arg1: i32) -> (i32, i32) {
    %c0_i32 = arith.constant 0 : i32
    %c0_i32_0 = arith.constant 0 : i32
    %c0_i32_1 = arith.constant 0 : i32
    return %c0_i32, %c0_i32_0 : i32, i32
  }
  func.func @transform_5(%arg0: i32, %arg1: i32) -> (i32, i32) {
    %c0_i32 = arith.constant 0 : i32
    %c0_i32_0 = arith.constant 0 : i32
    %c0_i32_1 = arith.constant 0 : i32
    return %c0_i32, %c0_i32_0 : i32, i32
  }
  func.func @transform_6(%arg0: i32, %arg1: i32) -> (i32, i32, i32) {
    %c0_i32 = arith.constant 0 : i32
    %c0_i32_0 = arith.constant 0 : i32
    return %arg0, %arg1, %c0_i32 : i32, i32, i32
  }
}

</mosaic_0001>

<bundles_post_ra>
// kernel: tpu_custom_call.1
= control target key start
LH: loop header
LB: loop body
LE: loop exit
PB: predicated region body
PF: predicated region fallthrough
CT: control target
= control target key end

     0   :  { %11 = vsyncpa [#allocation5], 0  ;;  %s1276_s0 = inlined_call_operand.hbm [shape: bf16[2,8,32], index: 0, kind: input, shape index: {}]   ;;  %s1277_s1 = inlined_call_operand.hbm [shape: bf16[2,8,32], index: 1, kind: input, shape index: {}]   ;;  %s1278_s2 = inlined_call_operand.vmem [shape: f32[2,8,1], index: 2, kind: input, shape index: {}]   ;;  %s1279_s3 = inlined_call_operand.vmem [shape: f32[2,8,1], index: 3, kind: input, shape index: {}]   ;;  %s1280_s4 = inlined_call_operand.hbm [shape: bf16[32,32], index: 4, kind: input, shape index: {}]   ;;  %s1281_s5 = inlined_call_operand.vmem [shape: bf16[64,64], index: 5, kind: input, shape index: {}]   ;;  %s1282_s6 = inlined_call_operand.hbm [shape: f32[2,8,32], index: 6, kind: output, shape index: {}]  }
   0x1   :  { %12 = vsyncpa [#allocation8], 0 }
   0x2   :  { %13 = vsyncpa [#allocation6], 0  ;;  %s31_s23 = sshll.u32 %s1277_s1, 4  ;;  %s1017_s24 = smov [#allocation7]   ;;  %s32_s23 = int_to_ptr.hbm [resolvable:$true] %s31_s23 }
   0x3   :  { %s33_s25 = sshll.u32 %s1017_s24, 4  ;;  %s18_s28 = sshll.u32 %s1276_s0, 4  ;;  %s34_s25 = int_to_ptr.vmem [resolvable:$true] %s33_s25  ;;  %s19_s28 = int_to_ptr.hbm [resolvable:$true] %s18_s28 }
   0x4   :  { %s1018_s29 = smov 64   ;;  %s1019_s30 = smov 4  }
   0x5   :  { %39 = dma.hbm_to_vmem [thread:$0]  %s32_s23, 128, %s34_s25, [#allocation8], %s1018_s29, %s1018_s29, %s1019_s30  }
   0x6   :  { %s1020_s7 = smov [#allocation4]   ;;  %s48_s11 = sshll.u32 %s1280_s4, 4  ;;  %s49_s11 = int_to_ptr.hbm [resolvable:$true] %s48_s11 }
   0x7   :  { %s20_s8 = sshll.u32 %s1020_s7, 4  ;;  %s1021_s1 = smov [#allocation9]   ;;  %s21_s8 = int_to_ptr.vmem [resolvable:$true] %s20_s8 }
   0x8   :  { %26 = dma.hbm_to_vmem [thread:$0]  %s19_s28, 128, %s21_s8, [#allocation5], %s1018_s29, %s1018_s29, %s1019_s30  }
   0x9   :  { %s50_s12 = sshll.u32 %s1021_s1, 4  ;;  %s51_s12 = int_to_ptr.vmem [resolvable:$true] %s50_s12 }
   0xa   :  { %56 = dma.hbm_to_vmem [thread:$0]  %s49_s11, 256, %s51_s12, [#allocation8], %s1018_s29, %s1018_s29, %s1019_s30  }
   0xb   :  { %1011 = dma.done.wait [#allocation5], 128  }
   0xc   :  { %1012 = vsyncadd [#allocation5], 4294967168 }
   0xd   :  { %1013 = dma.done.wait [#allocation8], 384  }
   0xe   :  { %1014 = vsyncadd [#allocation8], 4294966912  ;;  %v1022_v0 = vmov 0   ;;  %v860_v1 = vld [vmem:[%s1281_s5 + $0x18] sm:$0xff]  ;;  %v858_v2 = vld [vmem:[%s1281_s5 + $0x8] sm:$0xff]  ;;  %vm98_vm0 = vcmask 261120  }
   0xf   :  { %881 = vset.pattern.permute.xlu0 %v1022_v0  ;;  %882 = vset.pattern.permute.xlu1 %v1022_v0  ;;  %v859_v3 = vld [vmem:[%s1281_s5 + $0x10] sm:$0xff]  ;;  %v857_v4 = vld [vmem:[%s1281_s5] sm:$0xff]  ;;  %v84_v7 = vld [vmem:[#allocation4] sm:$0xf]  ;;  %vm148_vm1 = vcmask 519168   ;;  %vm230_vm2 = vcmask 64512  }
  0x10   :  { %108 = vmatpush.bf16.msra.mxu0 %v860_v1  ;;  %140 = vmatpush.bf16.msra.mxu1 %v858_v2  ;;  %v85_v5 = vld [vmem:[%s1278_s2] sm:$0xff]  ;;  %v1096_v6 = vld [vmem:[#allocation9 + $0x8] sm:$0xff]  ;;  %v1099_v8 = vld [vmem:[#allocation9] sm:$0xff]  ;;  %s1023_s5 = smov 104   ;;  %s1024_s21 = smov 120   ;;  %vm279_vm3 = vcmask 1043456  }
  0x11   :  { %117 = vperm.xlu0 %881, %v85_v5   ;;  %183 = vmatpush.bf16.msra.mxu3 %v858_v2  ;;  %v197_v9 = vld [vmem:[#allocation7] sm:$0xf]  ;;  %s1025_s22 = smov 112   ;;  %s1026_s23 = smov 96   ;;  %v151_v28 = vld [vmem:[#allocation4 + $0x4] sm:$0xf] }
  0x12   :  { %163 = vmatpush.bf16.msra.mxu2 %v860_v1  ;;  %s1027_s24 = smov 88   ;;  %v827_v46 = vld [vmem:[%s1278_s2 + $0x8] sm:$0xff]  ;;  %v496_v62 = vld [vmem:[#allocation7 + $0x4] sm:$0xf]  ;;  %s1028_s28 = smov 80   ;;  %vm363_vm15 = vcmask 130112  }
  0x13   :  { %s1029_s29 = smov 72   ;;  %s1030_s30 = smov 8  }
  0x14   :  { %109 = vmatpush.bf16.msra.mxu0 %v859_v3  ;;  %141 = vmatpush.bf16.msra.mxu1 %v857_v4  ;;  %s1031_s7 = smov 16   ;;  %s1033_s10 = smov [#allocation10]  }
  0x15   :  { %184 = vmatpush.bf16.msra.mxu3 %v857_v4  ;;  %s793_s11 = sshll.u32 %s1033_s10, 4  ;;  %s795_s0 = sshll.u32 %s1282_s6, 4  ;;  %s794_s11 = int_to_ptr.vmem [resolvable:$true] %s793_s11  ;;  %s796_s0 = int_to_ptr.hbm [resolvable:$true] %s795_s0 }
  0x16   :  { %164 = vmatpush.bf16.msra.mxu2 %v859_v3  ;;  %s1034_s13 = smov 128  }
  0x17   :  { %817 = vmatmul.msk.bf16.vlgmr.msra.gmra.mxu0 %vm98_vm0, %v84_v7  ;;  %826 = vmatmul.msk.bf16.vlgmr.msra.gmra.mxu1 %vm98_vm0, %v84_v7 }
  0x18   :  { %221 = vmatpush.bf16.msrb.mxu0 %v1096_v6  ;;  %829 = vmatmul.msk.bf16.vlgmr.msra.gmra.mxu3 %vm98_vm0, %v151_v28 }
  0x19   :  { %828 = vmatmul.msk.bf16.vlgmr.msra.gmra.mxu2 %vm98_vm0, %v151_v28 }
  0x1c   :  { %222 = vmatpush.bf16.msrb.mxu0 %v1099_v8 }
  0x27   :  { %838 = vmatmul.msk.bf16.vlgmr.msrb.gmra.mxu0 %vm98_vm0, %v197_v9 }
  0x83   :  { %v118_v10 = vpop.permute.xlu0 %117 }
  0x94   :  { %v111_v11 = vpop.f32.mrf.mxu0  ;;  %v143_v12 = vpop.f32.mrf.mxu1 }
  0x95   :  { %v120_v13 = vperm.slane %v111_v11, 0 }
  0x97   :  { %v121_v14 = vmul.f32 %v120_v13, %v118_v10 }
  0x99   :  { %v144_v15 = vadd.f32 %v143_v12, %v121_v14 }
  0x9b   :  { %v147_v16 = vpack.c.bf16 %v144_v15, %v144_v15  ;;  %v186_v47 = vpop.f32.mrf.mxu3 }
  0x9c   :  { %v113_v17 = vpop.f32.mrf.mxu0  ;;  %v145_v18 = vpop.f32.mrf.mxu1 }
  0x9d   :  { %149 = vst.msk [vmem:[#allocation2] sm:$0xf] %vm148_vm1, %v147_v16  ;;  %v166_v49 = vpop.f32.mrf.mxu2 }
  0x9e   :  { %v175_v2 = vperm.slane %v166_v49, 0 }
  0xa3   :  { %v188_v48 = vpop.f32.mrf.mxu3 }
  0xa4   :  { %v224_v19 = vpop.f32.mrf.mxu0  ;;  %v229_v20 = vld [vmem:[#allocation2] sm:$0xf] }
  0xa5   :  { %v228_v21 = vpack.c.bf16 %v224_v19, %v224_v19  ;;  %v235_v22 = vsel %vm230_vm2, %v229_v20, 0  ;;  %v272_v23 = vunpack.c.l.b16 %v229_v20  ;;  %v168_v50 = vpop.f32.mrf.mxu2 }
  0xa6   :  { %244 = vmatpush.bf16.xpose.msrb.mxu1 %v235_v22 }
  0xa7   :  { %v298_v24 = vunpack.c.l.b16 %v228_v21  ;;  %v1107_v25 = vpack.c.b16 %v272_v23, %v272_v23 }
  0xa9   :  { %v299_v26 = vpack.c.b16 %v298_v24, %v298_v24  ;;  %432 = vrot.lane.b32.xlu2 %v1107_v25, %s1023_s5  ;;  %302 = vrot.lane.b32.xlu0 %v1107_v25, %s1024_s21 }
  0xab   :  { %300 = vrot.lane.b32.xlu1 %v299_v26, %s1024_s21 }
  0xac   :  { %v226_v27 = vpop.f32.mrf.mxu0 }
  0xad   :  { %839 = vmatmul.msk.bf16.vlgmr.msrb.gmra.mxu1 %vm230_vm2, %v228_v21 }
  0xb1   :  { %365 = vrot.lane.b32.xlu2 %v299_v26, %s1025_s22  ;;  %430 = vrot.lane.b32.xlu0 %v299_v26, %s1023_s5 }
  0xb3   :  { %367 = vrot.lane.b32.xlu1 %v1107_v25, %s1025_s22 }
  0xb9   :  { %274 = vrot.lane.b32.xlu2 %v1107_v25, %s1026_s23 }
  0xc1   :  { %338 = vrot.lane.b32.xlu2 %v1107_v25, %s1027_s24 }
 0x103   :  { %v433_v29 = vpop.permute.xlu2 %432 }
 0x104   :  { %v438_v37 = vsel %vm230_vm2, %v433_v29, 0 }
 0x10b   :  { %v366_v30 = vpop.permute.xlu2 %365 }
 0x113   :  { %v275_v31 = vpop.permute.xlu2 %274 }
 0x114   :  { %v281_v32 = vsel %vm279_vm3, %v275_v31, 0 }
 0x115   :  { %290 = vmatpush.bf16.msrb.mxu2 %v281_v32 }
 0x11b   :  { %v339_v33 = vpop.permute.xlu2 %338  ;;  %v303_v34 = vpop.permute.xlu0 %302 }
 0x11c   :  { %v344_v35 = vsel %vm279_vm3, %v339_v33, 0  ;;  %v308_v36 = vsel %vm230_vm2, %v303_v34, 0 }
 0x11d   :  { %v301_v38 = vpop.permute.xlu1 %300  ;;  %317 = vmatpush.bf16.xpose.msrb.mxu3 %v308_v36  ;;  %353 = vmatpush.bf16.msra.mxu0 %v344_v35 }
 0x123   :  { %v431_v45 = vpop.permute.xlu0 %430 }
 0x124   :  { %841 = vmatmul.msk.bf16.vlgmr.msrb.gmra.mxu3 %vm230_vm2, %v301_v38 }
 0x125   :  { %447 = vmatpush.bf16.xpose.msra.mxu3 %v438_v37  ;;  %v368_v39 = vpop.permute.xlu1 %367 }
 0x126   :  { %v373_v40 = vsel %vm230_vm2, %v368_v39, 0 }
 0x127   :  { %382 = vmatpush.bf16.xpose.msra.mxu1 %v373_v40 }
 0x12a   :  { %v1132_v41 = vpop.f32.mrf.mxu1 }
 0x12b   :  { %vm250_vm4 = vcmp.eq.f32.partialorder %v1132_v41, 0.0 }
 0x12c   :  { %v251_v42 = vsel %vm250_vm4, -1e+20, %v1132_v41 }
 0x12d   :  { %v252_v43 = vsel %vm230_vm2, %v251_v42, -inf }
 0x12e   :  { %843 = vmatmul.msk.bf16.vlgmr.msra.gmra.mxu1 %vm230_vm2, %v366_v30  ;;  %253 = vmax.xlane.f32.xlu1 %v252_v43 }
 0x12f   :  { %508 = vmatpush.bf16.msrb.mxu1 %v1096_v6 }
 0x132   :  { %v248_v44 = vpop.f32.mrf.mxu1 }
 0x133   :  { %509 = vmatpush.bf16.msrb.mxu1 %v1099_v8  ;;  %v198_v8 = vld [vmem:[%s1279_s3] sm:$0xff] }
 0x134   :  { %845 = vmatmul.msk.bf16.vlgmr.msra.gmra.mxu3 %vm230_vm2, %v431_v45  ;;  %vm263_vm8 = vcmp.gt.f32.partialorder %v198_v8, 0.0 }
 0x135   :  { %v264_v12 = vsel %vm263_vm8, 1, %v1022_v0 }
 0x13e   :  { %848 = vmatmul.msk.bf16.vlgmr.msrb.gmra.mxu1 %vm98_vm0, %v496_v62 }
 0x147   :  { %172 = vperm.xlu1 %882, %v827_v46  }
 0x1a1   :  { %v254_v51 = vpop.xlane.xlu1 %253 }
 0x1a2   :  { %v255_v52 = vsub.f32 %v251_v42, %v254_v51 }
 0x1a4   :  { %v256_v53 = vmul.f32 1.442695, %v255_v52 }
 0x1a6   :  { %883 = vpow2.f32 %v256_v53 }
 0x1a7   :  { %v1143_v54 = vpop.f32.mrf.mxu3 }
 0x1a8   :  { %vm323_vm5 = vcmp.eq.f32.partialorder %v1143_v54, 0.0 }
 0x1a9   :  { %v324_v55 = vsel %vm323_vm5, -1e+20, %v1143_v54 }
 0x1aa   :  { %v325_v56 = vsel %vm230_vm2, %v324_v55, -inf }
 0x1ab   :  { %326 = vmax.xlane.f32.xlu2 %v325_v56  ;;  %v1148_v57 = vpop.f32.mrf.mxu1 }
 0x1ac   :  { %vm388_vm6 = vcmp.eq.f32.partialorder %v1148_v57, 0.0  ;;  %v884_v60 = vpop.eup %883 }
 0x1ad   :  { %v389_v58 = vsel %vm388_vm6, -1e+20, %v1148_v57  ;;  %v258_v63 = vsel %vm230_vm2, %v884_v60, 0.0 }
 0x1ae   :  { %v390_v59 = vsel %vm230_vm2, %v389_v58, -inf }
 0x1af   :  { %v321_v61 = vpop.f32.mrf.mxu3  ;;  %391 = vmax.xlane.f32.xlu0 %v390_v59 }
 0x1b3   :  { %259 = vadd.xlane.f32.xlu2 %v258_v63  ;;  %v386_v1 = vpop.f32.mrf.mxu1 }
 0x1b7   :  { %v1155_v3 = vpop.f32.mrf.mxu3 }
 0x1b8   :  { %vm453_vm7 = vcmp.eq.f32.partialorder %v1155_v3, 0.0 }
 0x1b9   :  { %v173_v4 = vpop.permute.xlu1 %172  ;;  %v454_v5 = vsel %vm453_vm7, -1e+20, %v1155_v3 }
 0x1ba   :  { %v176_v6 = vmul.f32 %v175_v2, %v173_v4  ;;  %v455_v7 = vsel %vm230_vm2, %v454_v5, -inf }
 0x1bb   :  { %456 = vmax.xlane.f32.xlu2 %v455_v7  ;;  %v511_v27 = vpop.f32.mrf.mxu1 }
 0x1bc   :  { %v187_v9 = vadd.f32 %v186_v47, %v176_v6  ;;  %v515_v43 = vpack.c.bf16 %v511_v27, %v511_v27 }
 0x1be   :  { %v190_v10 = vpack.c.bf16 %v187_v9, %v187_v9 }
 0x1bf   :  { %v451_v11 = vpop.f32.mrf.mxu3 }
 0x1c0   :  { %192 = vst.msk [vmem:[#allocation2 + $0x4] sm:$0xf] %vm148_vm1, %v190_v10  ;;  %vm428_vm1 = vcmask 195712  }
 0x1c3   :  { %266 = vperm.xlu0 %881, %v264_v12   ;;  %v513_v36 = vpop.f32.mrf.mxu1 }
 0x1c7   :  { %v517_v35 = vld [vmem:[#allocation2 + $0x4] sm:$0xf] }
 0x1c8   :  { %v522_v39 = vsel %vm230_vm2, %v517_v35, 0  ;;  %v559_v42 = vunpack.c.l.b16 %v517_v35 }
 0x1ca   :  { %v1175_v44 = vpack.c.b16 %v559_v42, %v559_v42 }
 0x1d3   :  { %403 = vrot.lane.b32.xlu2 %v1107_v25, %s1028_s28 }
 0x21e   :  { %v327_v13 = vpop.xlane.xlu2 %326 }
 0x21f   :  { %v328_v14 = vsub.f32 %v324_v55, %v327_v13 }
 0x221   :  { %v329_v15 = vmul.f32 1.442695, %v328_v14 }
 0x222   :  { %v392_v16 = vpop.xlane.xlu0 %391 }
 0x223   :  { %885 = vpow2.f32 %v329_v15  ;;  %v393_v17 = vsub.f32 %v389_v58, %v392_v16 }
 0x225   :  { %v394_v18 = vmul.f32 1.442695, %v393_v17 }
 0x226   :  { %v260_v19 = vpop.xlane.xlu2 %259 }
 0x227   :  { %887 = vpow2.f32 %v394_v18 }
 0x228   :  { %889 = vrcp.f32 %v260_v19 }
 0x229   :  { %v886_v20 = vpop.eup %885 }
 0x22a   :  { %v331_v21 = vsel %vm230_vm2, %v886_v20, 0.0 }
 0x22b   :  { %332 = vadd.xlane.f32.xlu1 %v331_v21 }
 0x22d   :  { %v888_v22 = vpop.eup %887 }
 0x22e   :  { %v457_v23 = vpop.xlane.xlu2 %456  ;;  %v396_v24 = vsel %vm230_vm2, %v888_v22, 0.0  ;;  %v890_v29 = vpop.eup %889 }
 0x22f   :  { %v458_v26 = vsub.f32 %v454_v5, %v457_v23  ;;  %397 = vadd.xlane.f32.xlu0 %v396_v24  ;;  %v262_v30 = vmul.f32 %v890_v29, %v884_v60 }
 0x231   :  { %v459_v28 = vmul.f32 1.442695, %v458_v26 }
 0x233   :  { %891 = vpow2.f32 %v459_v28 }
 0x235   :  { %v267_v31 = vpop.permute.xlu0 %266 }
 0x236   :  { %vm268_vm9 = vcmp.eq.s32.totalorder %v267_v31, 1  ;;  %v404_v32 = vpop.permute.xlu2 %403 }
 0x237   :  { %v269_v33 = vsel %vm268_vm9, %v262_v30, %v1132_v41  ;;  %v409_v34 = vsel %vm279_vm3, %v404_v32, 0  ;;  %v585_v41 = vunpack.c.l.b16 %v515_v43 }
 0x238   :  { %v270_v37 = vpack.c.bf16 %v269_v33, %v269_v33  ;;  %418 = vmatpush.bf16.msra.mxu2 %v409_v34 }
 0x239   :  { %v892_v38 = vpop.eup %891  ;;  %v586_v45 = vpack.c.b16 %v585_v41, %v585_v41 }
 0x23a   :  { %840 = vmatmul.msk.bf16.vlgmr.msrb.gmra.mxu2 %vm230_vm2, %v270_v37  ;;  %v461_v40 = vsel %vm230_vm2, %v892_v38, 0.0 }
 0x23b   :  { %462 = vadd.xlane.f32.xlu2 %v461_v40 }
 0x23c   :  { %531 = vmatpush.bf16.xpose.msrb.mxu2 %v522_v39 }
 0x243   :  { %589 = vrot.lane.b32.xlu0 %v1175_v44, %s1024_s21 }
 0x244   :  { %468 = vrot.lane.b32.xlu1 %v1107_v25, %s1029_s29 }
 0x24b   :  { %653 = vrot.lane.b32.xlu0 %v1175_v44, %s1025_s22 }
 0x24c   :  { %587 = vrot.lane.b32.xlu1 %v586_v45, %s1024_s21 }
 0x253   :  { %717 = vrot.lane.b32.xlu0 %v1175_v44, %s1023_s5  ;;  %651 = vrot.lane.b32.xlu2 %v586_v45, %s1025_s22 }
 0x254   :  { %715 = vrot.lane.b32.xlu1 %v586_v45, %s1023_s5 }
 0x29e   :  { %v333_v46 = vpop.xlane.xlu1 %332 }
 0x29f   :  { %893 = vrcp.f32 %v333_v46 }
 0x2a2   :  { %v398_v47 = vpop.xlane.xlu0 %397 }
 0x2a3   :  { %895 = vrcp.f32 %v398_v47  ;;  %v847_v47 = vld [vmem:[%s1279_s3 + $0x8] sm:$0xff]  ;;  %s1032_s3 = smov 24  }
 0x2a4   :  { %vm550_vm14 = vcmp.gt.f32.partialorder %v847_v47, 0.0 }
 0x2a5   :  { %v894_v48 = vpop.eup %893 }
 0x2a6   :  { %v335_v25 = vmul.f32 %v894_v48, %v886_v20 }
 0x2a8   :  { %v336_v49 = vsel %vm268_vm9, %v335_v25, %v1143_v54 }
 0x2a9   :  { %v896_v50 = vpop.eup %895  ;;  %v337_v51 = vpack.c.bf16 %v336_v49, %v336_v49  ;;  %v551_v49 = vsel %vm550_vm14, 1, %v1022_v0 }
 0x2aa   :  { %v400_v52 = vmul.f32 %v896_v50, %v888_v22 }
 0x2ab   :  { %842 = vmatmul.msk.bf16.vlgmr.msra.gmra.mxu0 %vm230_vm2, %v337_v51 }
 0x2ac   :  { %v401_v53 = vsel %vm268_vm9, %v400_v52, %v1148_v57 }
 0x2ad   :  { %v402_v55 = vpack.c.bf16 %v401_v53, %v401_v53 }
 0x2ae   :  { %v463_v56 = vpop.xlane.xlu2 %462 }
 0x2af   :  { %897 = vrcp.f32 %v463_v56  ;;  %844 = vmatmul.msk.bf16.vlgmr.msra.gmra.mxu2 %vm230_vm2, %v402_v55 }
 0x2b5   :  { %v898_v58 = vpop.eup %897  ;;  %v590_v59 = vpop.permute.xlu0 %589 }
 0x2b6   :  { %v465_v60 = vmul.f32 %v898_v58, %v892_v38  ;;  %v469_v61 = vpop.permute.xlu1 %468  ;;  %v595_v63 = vsel %vm230_vm2, %v590_v59, 0  ;;  %v652_v8 = vpop.permute.xlu2 %651 }
 0x2b7   :  { %v474_v62 = vsel %vm279_vm3, %v469_v61, 0 }
 0x2b8   :  { %v466_v54 = vsel %vm268_vm9, %v465_v60, %v1155_v3  ;;  %483 = vmatpush.bf16.msrb.mxu0 %v474_v62 }
 0x2b9   :  { %v467_v1 = vpack.c.bf16 %v466_v54, %v466_v54 }
 0x2bb   :  { %846 = vmatmul.msk.bf16.vlgmr.msrb.gmra.mxu0 %vm230_vm2, %v467_v1 }
 0x2bc   :  { %604 = vmatpush.bf16.xpose.msra.mxu0 %v595_v63 }
 0x2bd   :  { %v292_v57 = vpop.f32.mrf.mxu2  ;;  %v654_v2 = vpop.permute.xlu0 %653 }
 0x2be   :  { %296 = vst.msk [vmem:[#allocation3] sm:$0xff] %vm230_vm2, %v292_v57  ;;  %v659_v4 = vsel %vm230_vm2, %v654_v2, 0  ;;  %v588_v7 = vpop.permute.xlu1 %587 }
 0x2bf   :  { %849 = vmatmul.msk.bf16.vlgmr.msrb.gmra.mxu2 %vm230_vm2, %v515_v43 }
 0x2c0   :  { %668 = vmatpush.bf16.xpose.msra.mxu2 %v659_v4 }
 0x2c5   :  { %v294_v5 = vpop.f32.mrf.mxu2  ;;  %v718_v6 = vpop.permute.xlu0 %717 }
 0x2c6   :  { %v723_v3 = vsel %vm230_vm2, %v718_v6, 0  ;;  %v716_v9 = vpop.permute.xlu1 %715 }
 0x2c7   :  { %732 = vmatpush.bf16.xpose.msrb.mxu0 %v723_v3 }
 0x2cb   :  { %851 = vmatmul.msk.bf16.vlgmr.msra.gmra.mxu0 %vm230_vm2, %v588_v7 }
 0x2cf   :  { %853 = vmatmul.msk.bf16.vlgmr.msra.gmra.mxu2 %vm230_vm2, %v652_v8 }
 0x2db   :  { %855 = vmatmul.msk.bf16.vlgmr.msrb.gmra.mxu0 %vm230_vm2, %v716_v9 }
 0x328   :  { %v355_v10 = vpop.f32.mrf.mxu0 }
 0x330   :  { %v357_v11 = vpop.f32.mrf.mxu0 }
 0x332   :  { %v420_v12 = vpop.f32.mrf.mxu2 }
 0x338   :  { %v1206_v13 = vpop.f32.mrf.mxu0 }
 0x33a   :  { %v422_v14 = vpop.f32.mrf.mxu2 }
 0x340   :  { %v487_v15 = vpop.f32.mrf.mxu0 }
 0x342   :  { %v1208_v16 = vpop.f32.mrf.mxu2 }
 0x343   :  { %vm537_vm10 = vcmp.eq.f32.partialorder %v1208_v16, 0.0 }
 0x344   :  { %v538_v17 = vsel %vm537_vm10, -1e+20, %v1208_v16 }
 0x345   :  { %v539_v18 = vsel %vm230_vm2, %v538_v17, -inf }
 0x346   :  { %540 = vmax.xlane.f32.xlu0 %v539_v18 }
 0x348   :  { %v1213_v19 = vpop.f32.mrf.mxu0 }
 0x349   :  { %vm610_vm11 = vcmp.eq.f32.partialorder %v1213_v19, 0.0 }
 0x34a   :  { %v535_v20 = vpop.f32.mrf.mxu2  ;;  %v611_v21 = vsel %vm610_vm11, -1e+20, %v1213_v19 }
 0x34b   :  { %v612_v22 = vsel %vm230_vm2, %v611_v21, -inf }
 0x34c   :  { %613 = vmax.xlane.f32.xlu1 %v612_v22 }
 0x350   :  { %v608_v23 = vpop.f32.mrf.mxu0 }
 0x352   :  { %v1218_v24 = vpop.f32.mrf.mxu2 }
 0x353   :  { %vm674_vm12 = vcmp.eq.f32.partialorder %v1218_v24, 0.0 }
 0x354   :  { %v675_v26 = vsel %vm674_vm12, -1e+20, %v1218_v24 }
 0x355   :  { %v676_v27 = vsel %vm230_vm2, %v675_v26, -inf }
 0x356   :  { %677 = vmax.xlane.f32.xlu2 %v676_v27 }
 0x358   :  { %v1223_v28 = vpop.f32.mrf.mxu0 }
 0x359   :  { %vm738_vm13 = vcmp.eq.f32.partialorder %v1223_v28, 0.0 }
 0x35a   :  { %v672_v29 = vpop.f32.mrf.mxu2  ;;  %v739_v30 = vsel %vm738_vm13, -1e+20, %v1223_v28 }
 0x35b   :  { %v740_v31 = vsel %vm230_vm2, %v739_v30, -inf }
 0x35c   :  { %741 = vmax.xlane.f32.xlu0 %v740_v31 }
 0x360   :  { %v736_v32 = vpop.f32.mrf.mxu0 }
 0x36e   :  { %561 = vrot.lane.b32.xlu2 %v1175_v44, %s1026_s23 }
 0x376   :  { %689 = vrot.lane.b32.xlu2 %v1175_v44, %s1028_s28 }
 0x37e   :  { %753 = vrot.lane.b32.xlu2 %v1175_v44, %s1029_s29 }
 0x386   :  { %360 = vrot.lane.b32.xlu2 %v355_v10, %s1030_s30 }
 0x38e   :  { %425 = vrot.lane.b32.xlu2 %v420_v12, %s1031_s7 }
 0x3b9   :  { %v541_v33 = vpop.xlane.xlu0 %540 }
 0x3ba   :  { %v542_v34 = vsub.f32 %v538_v17, %v541_v33 }
 0x3bc   :  { %v543_v35 = vmul.f32 1.442695, %v542_v34 }
 0x3be   :  { %899 = vpow2.f32 %v543_v35 }
 0x3bf   :  { %v614_v36 = vpop.xlane.xlu1 %613 }
 0x3c0   :  { %v615_v37 = vsub.f32 %v611_v21, %v614_v36 }
 0x3c2   :  { %v616_v38 = vmul.f32 1.442695, %v615_v37 }
 0x3c4   :  { %v900_v39 = vpop.eup %899  ;;  %901 = vpow2.f32 %v616_v38 }
 0x3c5   :  { %v545_v40 = vsel %vm230_vm2, %v900_v39, 0.0 }
 0x3c6   :  { %546 = vadd.xlane.f32.xlu1 %v545_v40 }
 0x3c9   :  { %v678_v42 = vpop.xlane.xlu2 %677 }
 0x3ca   :  { %v902_v43 = vpop.eup %901  ;;  %v679_v55 = vsub.f32 %v675_v26, %v678_v42 }
 0x3cb   :  { %v618_v41 = vsel %vm230_vm2, %v902_v43, 0.0 }
 0x3cc   :  { %619 = vadd.xlane.f32.xlu0 %v618_v41  ;;  %v680_v58 = vmul.f32 1.442695, %v679_v55 }
 0x3ce   :  { %903 = vpow2.f32 %v680_v58 }
 0x3cf   :  { %v742_v53 = vpop.xlane.xlu0 %741 }
 0x3d0   :  { %v743_v56 = vsub.f32 %v739_v30, %v742_v53 }
 0x3d1   :  { %v562_v45 = vpop.permute.xlu2 %561 }
 0x3d2   :  { %v567_v46 = vsel %vm279_vm3, %v562_v45, 0  ;;  %v744_v59 = vmul.f32 1.442695, %v743_v56 }
 0x3d3   :  { %576 = vmatpush.bf16.msrb.mxu3 %v567_v46 }
 0x3d4   :  { %905 = vpow2.f32 %v744_v59  ;;  %v904_v0 = vpop.eup %903 }
 0x3d9   :  { %v690_v48 = vpop.permute.xlu2 %689 }
 0x3da   :  { %v695_v25 = vsel %vm279_vm3, %v690_v48, 0  ;;  %v906_v60 = vpop.eup %905 }
 0x3db   :  { %704 = vmatpush.bf16.msra.mxu3 %v695_v25  ;;  %v746_v61 = vsel %vm230_vm2, %v906_v60, 0.0 }
 0x3df   :  { %553 = vperm.xlu1 %882, %v551_v49  }
 0x3e0   :  { %625 = vrot.lane.b32.xlu0 %v1175_v44, %s1027_s24  ;;  %v682_v44 = vsel %vm230_vm2, %v904_v0, 0.0 }
 0x3e1   :  { %v754_v50 = vpop.permute.xlu2 %753 }
 0x3e2   :  { %v759_v8 = vsel %vm279_vm3, %v754_v50, 0 }
 0x3e9   :  { %v361_v51 = vpop.permute.xlu2 %360 }
 0x3ea   :  { %364 = vst.msk [vmem:[#allocation3] sm:$0xff] %vm363_vm15, %v361_v51 }
 0x3f1   :  { %v426_v52 = vpop.permute.xlu2 %425 }
 0x3f2   :  { %429 = vst.msk [vmem:[#allocation3] sm:$0xff] %vm428_vm1, %v426_v52 }
 0x409   :  { %683 = vadd.xlane.f32.xlu1 %v682_v44 }
 0x40a   :  { %747 = vadd.xlane.f32.xlu0 %v746_v61 }
 0x439   :  { %v547_v62 = vpop.xlane.xlu1 %546 }
 0x43a   :  { %907 = vrcp.f32 %v547_v62 }
 0x43f   :  { %v620_v54 = vpop.xlane.xlu0 %619 }
 0x440   :  { %909 = vrcp.f32 %v620_v54  ;;  %v908_v63 = vpop.eup %907 }
 0x441   :  { %v549_v57 = vmul.f32 %v908_v63, %v900_v39 }
 0x446   :  { %v910_v1 = vpop.eup %909 }
 0x447   :  { %v622_v2 = vmul.f32 %v910_v1, %v902_v43 }
 0x451   :  { %v554_v4 = vpop.permute.xlu1 %553 }
 0x452   :  { %vm555_vm4 = vcmp.eq.s32.totalorder %v554_v4, 1  ;;  %v626_v5 = vpop.permute.xlu0 %625 }
 0x453   :  { %v556_v6 = vsel %vm555_vm4, %v549_v57, %v1208_v16  ;;  %v623_v3 = vsel %vm555_vm4, %v622_v2, %v1213_v19  ;;  %v631_v7 = vsel %vm279_vm3, %v626_v5, 0  ;;  %vm493_vm3 = vcmask 261312  }
 0x454   :  { %v557_v9 = vpack.c.bf16 %v556_v6, %v556_v6  ;;  %v624_v10 = vpack.c.bf16 %v623_v3, %v623_v3  ;;  %640 = vmatpush.bf16.msra.mxu1 %v631_v7 }
 0x456   :  { %850 = vmatmul.msk.bf16.vlgmr.msrb.gmra.mxu3 %vm230_vm2, %v557_v9 }
 0x457   :  { %852 = vmatmul.msk.bf16.vlgmr.msra.gmra.mxu1 %vm230_vm2, %v624_v10 }
 0x458   :  { %768 = vmatpush.bf16.msrb.mxu1 %v759_v8 }
 0x47c   :  { %v684_v11 = vpop.xlane.xlu1 %683 }
 0x47d   :  { %911 = vrcp.f32 %v684_v11  ;;  %v748_v12 = vpop.xlane.xlu0 %747 }
 0x47e   :  { %913 = vrcp.f32 %v748_v12 }
 0x483   :  { %v912_v14 = vpop.eup %911 }
 0x484   :  { %v914_v15 = vpop.eup %913  ;;  %v686_v16 = vmul.f32 %v912_v14, %v904_v0 }
 0x485   :  { %v750_v17 = vmul.f32 %v914_v15, %v906_v60 }
 0x486   :  { %v687_v18 = vsel %vm555_vm4, %v686_v16, %v1218_v24 }
 0x487   :  { %v751_v19 = vsel %vm555_vm4, %v750_v17, %v1223_v28  ;;  %v688_v20 = vpack.c.bf16 %v687_v18, %v687_v18 }
 0x488   :  { %v752_v21 = vpack.c.bf16 %v751_v19, %v751_v19 }
 0x489   :  { %854 = vmatmul.msk.bf16.vlgmr.msra.gmra.mxu3 %vm230_vm2, %v688_v20 }
 0x48a   :  { %856 = vmatmul.msk.bf16.vlgmr.msrb.gmra.mxu1 %vm230_vm2, %v752_v21 }
 0x4d4   :  { %v642_v22 = vpop.f32.mrf.mxu1 }
 0x4d5   :  { %647 = vrot.lane.b32.xlu2 %v642_v22, %s1030_s30 }
 0x4d9   :  { %v578_v23 = vpop.f32.mrf.mxu3 }
 0x4da   :  { %583 = vst.msk [vmem:[#allocation3 + $0x8] sm:$0xff] %vm230_vm2, %v578_v23 }
 0x4dc   :  { %v644_v26 = vpop.f32.mrf.mxu1 }
 0x4dd   :  { %490 = vrot.lane.b32.xlu2 %v1206_v13, %s1032_s3 }
 0x4e1   :  { %v580_v24 = vpop.f32.mrf.mxu3 }
 0x507   :  { %v770_v27 = vpop.f32.mrf.mxu1 }
 0x508   :  { %775 = vrot.lane.b32.xlu0 %v770_v27, %s1032_s3 }
 0x50c   :  { %v706_v28 = vpop.f32.mrf.mxu3 }
 0x50d   :  { %711 = vrot.lane.b32.xlu1 %v706_v28, %s1031_s7 }
 0x50f   :  { %v772_v29 = vpop.f32.mrf.mxu1 }
 0x514   :  { %v708_v30 = vpop.f32.mrf.mxu3 }
 0x52f   :  { %v648_v31 = vpop.permute.xlu2 %647 }
 0x530   :  { %650 = vst.msk [vmem:[#allocation3 + $0x8] sm:$0xff] %vm363_vm15, %v648_v31 }
 0x537   :  { %v491_v32 = vpop.permute.xlu2 %490 }
 0x538   :  { %494 = vst.msk [vmem:[#allocation3] sm:$0xff] %vm493_vm3, %v491_v32 }
 0x53f   :  { %v779_v33 = vld [vmem:[#allocation3] sm:$0xff] }
 0x540   :  { %vm781_vm2 = vcmp.ge.f32.partialorder %v779_v33, 0.0  ;;  %v783_v34 = vmul.f32 0.01, %v779_v33 }
 0x542   :  { %v785_v35 = vsel %vm781_vm2, %v779_v33, %v783_v34 }
 0x543   :  { %787 = vst.msk [vmem:[#allocation10] sm:$0xff] %vm98_vm0, %v785_v35 }
 0x57a   :  { %v776_v36 = vpop.permute.xlu0 %775 }
 0x57f   :  { %v712_v13 = vpop.permute.xlu1 %711 }
 0x580   :  { %714 = vst.msk [vmem:[#allocation3 + $0x8] sm:$0xff] %vm428_vm1, %v712_v13 }
 0x581   :  { %778 = vst.msk [vmem:[#allocation3 + $0x8] sm:$0xff] %vm493_vm3, %v776_v36 }
 0x588   :  { %v780_v37 = vld [vmem:[#allocation3 + $0x8] sm:$0xff] }
 0x589   :  { %vm782_vm5 = vcmp.ge.f32.partialorder %v780_v37, 0.0  ;;  %v784_v38 = vmul.f32 0.01, %v780_v37 }
 0x58b   :  { %v786_v39 = vsel %vm782_vm5, %v780_v37, %v784_v38 }
 0x58c   :  { %788 = vst.msk [vmem:[#allocation10 + $0x8] sm:$0xff] %vm98_vm0, %v786_v39 }
 0x58d   :  { %801 = dma.vmem_to_hbm [thread:$0]  %s794_s11, 256, %s796_s0, [#allocation6], %s1034_s13, %s1034_s13, %s1030_s30  }
 0x58e   :  { %1015 = dma.done.wait [#allocation6], 256  }
 0x58f   :  { %1016 = vsyncadd [#allocation6], 4294967040 }
 0x590   :  { %806 = vsyncpa [#allocation5], 1 }
 0x591   :  { %807 = vsyncpa [#allocation8], 1 }
 0x592   :  { %808 = vsyncpa [#allocation6], 1 }

</bundles_post_ra>
